<compile_context>
chip_gen: v5e
topology: v5e:2x2
jax: 0.10.0
libtpu: 0.0.40
codegen_flags: <defaults>
</compile_context>

<pallas_src>
import jax
import jax.numpy as jnp
from jax.experimental import pallas as pl
from jax.experimental.pallas import tpu as pltpu


def _normalize_kernel(x_ref, sb_ref, out_ref):
    # x_ref/out_ref: (block_rows, block_cols); sb_ref: (block_rows, 2) f32
    sb = sb_ref[...]
    scale = sb[:, 0:1]                       # (block_rows, 1)
    bias = sb[:, 1:2]                        # (block_rows, 1)
    x = x_ref[...].astype(jnp.float32)
    out_ref[...] = (x * scale + bias).astype(out_ref.dtype)


def _largest_aligned_divisor(n, align, upper):
    """Largest d <= upper with d % align == 0 and n % d == 0; None if absent."""
    upper = min(upper, n)
    best = None
    d = align
    while d <= upper:
        if n % d == 0:
            best = d
        d += align
    return best


def _pick_blocks(rows, cols, itemsize, target_bytes=4 << 20):
    """~target_bytes per input block, lane-dense, no ragged column edge when
    avoidable, sublane-pack-friendly row counts."""
    elems = max(128, target_bytes // itemsize)

    if cols * itemsize <= target_bytes:
        # A whole spatial row fits the budget: keep full, lane-dense columns.
        block_cols = cols
        br = (elems // cols) // 32 * 32      # multiple of 32 (bf16/fp8 friendly)
        if br >= rows or br == 0:
            block_rows = rows                # full dim is always legal
        else:
            block_rows = br
    else:
        # Columns alone exceed the budget: tile the column axis.
        block_rows = rows if rows <= 32 else 32
        per_row = max(128, elems // block_rows)
        if cols <= 128:
            block_cols = cols
        else:
            d = _largest_aligned_divisor(cols, 128, per_row)
            if d is not None:
                block_cols = d               # even split -> unmasked stores
            else:
                block_cols = max(128, per_row // 128 * 128)  # ragged fallback
    return block_rows, block_cols


def normalization_forward(img, mean, std):
    """NCHW per-channel normalize: (img - mean[c]) / std[c]."""
    n, c, h, w = img.shape
    assert mean.shape == (c,) and std.shape == (c,)

    rows = n * c          # one row per (n, c) image plane
    cols = h * w          # lane-dense flattened spatial dimension

    out_dtype = jnp.result_type(img.dtype, mean.dtype, std.dtype)
    if not jnp.issubdtype(out_dtype, jnp.floating):
        out_dtype = jnp.float32              # torch-style promotion for int images

    # Fold the divide into an FMA once per channel: y = x*(1/std) + (-mean/std).
    inv_std = 1.0 / std.astype(jnp.float32)
    sb_c = jnp.stack([inv_std, -mean.astype(jnp.float32) * inv_std], axis=-1)  # (c, 2)
    sb = jnp.broadcast_to(sb_c[None], (n, c, 2)).reshape(rows, 2)

    x2d = img.reshape(rows, cols)            # free view for contiguous NCHW

    block_rows, block_cols = _pick_blocks(rows, cols, jnp.dtype(img.dtype).itemsize)

    grid_rows = pl.cdiv(rows, block_rows)
    grid_cols = pl.cdiv(cols, block_cols)

    # Collapse degenerate axes; otherwise lead with the multi-block axis so
    # megacore (v7x) splits the axis that actually has work.
    if grid_cols == 1:
        grid = (grid_rows,)
        x_map = lambda i: (i, 0)
        sb_map = lambda i: (i, 0)
    elif grid_rows == 1:
        grid = (grid_cols,)
        x_map = lambda j: (0, j)
        sb_map = lambda j: (0, 0)
    elif grid_cols >= grid_rows:
        grid = (grid_cols, grid_rows)
        x_map = lambda j, i: (i, j)
        sb_map = lambda j, i: (i, 0)
    else:
        grid = (grid_rows, grid_cols)
        x_map = lambda i, j: (i, j)
        sb_map = lambda i, j: (i, 0)

    in_bytes = rows * cols * jnp.dtype(img.dtype).itemsize
    out_bytes = rows * cols * jnp.dtype(out_dtype).itemsize

    out2d = pl.pallas_call(
        _normalize_kernel,
        out_shape=jax.ShapeDtypeStruct((rows, cols), out_dtype),
        grid=grid,
        in_specs=[
            pl.BlockSpec((block_rows, block_cols), x_map),
            pl.BlockSpec((block_rows, 2), sb_map),
        ],
        out_specs=pl.BlockSpec((block_rows, block_cols), x_map),
        compiler_params=pltpu.CompilerParams(
            dimension_semantics=("parallel",) * len(grid),
            # 4 MiB blocks, double-buffered in+out ~= 16-17 MiB; raise the
            # scoped limit so v5e's 16 MiB default doesn't shrink pipelining.
            vmem_limit_bytes=48 << 20,
        ),
        cost_estimate=pl.CostEstimate(
            flops=2 * rows * cols,
            transcendentals=0,
            bytes_accessed=in_bytes + out_bytes + sb.size * 4,
        ),
    )(x2d, sb)

    # TODO(synk): for the real 2x end-to-end win, fuse this HBM-roofline pass
    # into its consumer (first conv/matmul) or the preceding uint8->float decode.
    return out2d.reshape(n, c, h, w)


if __name__ == "__main__":
    key = jax.random.PRNGKey(0)
    (k_img,) = jax.random.split(key, 1)

    N, C, H, W = 2, 4, 16, 16
    img = jax.random.normal(k_img, (N, C, H, W), dtype=jnp.float32)

    # Deterministic per-channel mean/std (ImageNet-style constants).
    mean = jnp.array([0.485, 0.456, 0.406, 0.5], dtype=jnp.float32)
    std = jnp.array([0.229, 0.224, 0.225, 0.25], dtype=jnp.float32)

    out = normalization_forward(img, mean, std)
    out = jax.block_until_ready(out)

    # Reference check against plain JAX broadcasting (same semantics as torch).
    ref = (img - mean[None, :, None, None]) / std[None, :, None, None]
    assert out.shape == img.shape and out.dtype == ref.dtype
    assert jnp.allclose(out, ref, atol=1e-5, rtol=1e-5)

    print("KERNEL_OK")
</pallas_src>

<mosaic_0001>
module attributes {stable_mosaic.version = 11 : i64} {
  func.func @_normalize_kernel(%arg0: i32, %arg1: memref<8x256xf32, #tpu.memory_space<vmem>>, %arg2: memref<8x2xf32, #tpu.memory_space<vmem>>, %arg3: memref<8x256xf32, #tpu.memory_space<vmem>>) attributes {dimension_semantics = [#tpu.dimension_semantics<parallel>], iteration_bounds = array<i64: 1>, scalar_prefetch = 0 : i64, scratch_operands = 0 : i64, tpu.core_type = #tpu.core_type<tc>, window_params = [{transform_indices = @transform_0, window_bounds = array<i64: 8, 256>}, {transform_indices = @transform_1, window_bounds = array<i64: 8, 2>}, {transform_indices = @transform_2, window_bounds = array<i64: 8, 256>}]} {
    %c0 = arith.constant 0 : index
    %c0_0 = arith.constant 0 : index
    %0 = vector.load %arg2[%c0, %c0_0] : memref<8x2xf32, #tpu.memory_space<vmem>>, vector<8x2xf32>
    %1 = vector.extract_strided_slice %0 {offsets = [0, 0], sizes = [8, 1], strides = [1, 1]} : vector<8x2xf32> to vector<8x1xf32>
    %2 = vector.extract_strided_slice %0 {offsets = [0, 1], sizes = [8, 1], strides = [1, 1]} : vector<8x2xf32> to vector<8x1xf32>
    %c0_1 = arith.constant 0 : index
    %c0_2 = arith.constant 0 : index
    %3 = vector.load %arg1[%c0_1, %c0_2] : memref<8x256xf32, #tpu.memory_space<vmem>>, vector<8x256xf32>
    %4 = vector.broadcast %1 : vector<8x1xf32> to vector<8x256xf32>
    %5 = arith.mulf %3, %4 : vector<8x256xf32>
    %6 = vector.broadcast %2 : vector<8x1xf32> to vector<8x256xf32>
    %7 = arith.addf %5, %6 : vector<8x256xf32>
    %c0_3 = arith.constant 0 : index
    %c0_4 = arith.constant 0 : index
    %8 = vector.load %arg3[%c0_3, %c0_4] : memref<8x256xf32, #tpu.memory_space<vmem>>, vector<8x256xf32>
    tpu.vector_store %arg3[%c0_3, %c0_4], %7 {strides = array<i32>} : memref<8x256xf32, #tpu.memory_space<vmem>>, vector<8x256xf32>,
    return
  }
  func.func @transform_0(%arg0: i32) -> (i32, i32) {
    %c0_i32 = arith.constant 0 : i32
    %c0_i32_0 = arith.constant 0 : i32
    return %arg0, %c0_i32 : i32, i32
  }
  func.func @transform_1(%arg0: i32) -> (i32, i32) {
    %c0_i32 = arith.constant 0 : i32
    %c0_i32_0 = arith.constant 0 : i32
    return %arg0, %c0_i32 : i32, i32
  }
  func.func @transform_2(%arg0: i32) -> (i32, i32) {
    %c0_i32 = arith.constant 0 : i32
    %c0_i32_0 = arith.constant 0 : i32
    return %arg0, %c0_i32 : i32, i32
  }
}

</mosaic_0001>

<bundles_post_ra>
// kernel: tpu_custom_call.1
= control target key start
LH: loop header
LB: loop body
LE: loop exit
PB: predicated region body
PF: predicated region fallthrough
CT: control target
= control target key end

     0   :  { %7 = vsyncpa [#allocation3], 0  ;;  %s147_s0 = inlined_call_operand.hbm [shape: f32[8,256], index: 0, kind: input, shape index: {}]   ;;  %s148_s1 = inlined_call_operand.vmem [shape: f32[8,2], index: 1, kind: input, shape index: {}]   ;;  %s149_s2 = inlined_call_operand.hbm [shape: f32[8,256], index: 2, kind: output, shape index: {}]  }
   0x1   :  { %8 = vsyncpa [#allocation4], 0  ;;  %s14_s11 = sshll.u32 %s147_s0, 4  ;;  %s119_s12 = smov [#allocation2]   ;;  %s15_s11 = int_to_ptr.hbm [resolvable:$true] %s14_s11 }
   0x2   :  { %s16_s13 = sshll.u32 %s119_s12, 4  ;;  %s17_s13 = int_to_ptr.vmem [resolvable:$true] %s16_s13 }
   0x3   :  { %19 = dma.hbm_to_vmem [thread:$0]  %s15_s11, 256, %s17_s13, [#allocation3]  }
   0x4   :  { %115 = dma.done.wait [#allocation3], 256  }
   0x5   :  { %116 = vsyncadd [#allocation3], 4294967040  ;;  %v120_v0 = vmov 0   ;;  %v26_v1 = vld [vmem:[%s148_s1] sm:$0xff]  ;;  %v121_v2 = vmov 1   ;;  %v28_v5 = vld [vmem:[#allocation2 + $0x8] sm:$0xff] }
   0x6   :  { %65 = vset.pattern.permute.xlu0 %v120_v0  ;;  %v27_v4 = vld [vmem:[#allocation2] sm:$0xff]  ;;  %s122_s0 = smov [#allocation5]   ;;  %s51_s19 = sshll.u32 %s149_s2, 4  ;;  %s52_s19 = int_to_ptr.hbm [resolvable:$true] %s51_s19 }
   0x7   :  { %31 = vperm.xlu0 %65, %v26_v1   ;;  %s49_s16 = sshll.u32 %s122_s0, 4  ;;  %s50_s16 = int_to_ptr.vmem [resolvable:$true] %s49_s16 }
   0xf   :  { %66 = vset.pattern.permute.xlu0 %v121_v2 }
  0x10   :  { %37 = vperm.xlu0 %66, %v26_v1  }
  0x79   :  { %v32_v3 = vpop.permute.xlu0 %31 }
  0x7a   :  { %v34_v6 = vmul.f32 %v32_v3, %v27_v4  ;;  %v35_v7 = vmul.f32 %v32_v3, %v28_v5 }
  0x82   :  { %v38_v8 = vpop.permute.xlu0 %37 }
  0x83   :  { %v40_v9 = vadd.f32 %v38_v8, %v34_v6  ;;  %v41_v10 = vadd.f32 %v38_v8, %v35_v7 }
  0x85   :  { %42 = vst [vmem:[#allocation5] sm:$0xff] %v40_v9 }
  0x86   :  { %43 = vst [vmem:[#allocation5 + $0x8] sm:$0xff] %v41_v10 }
  0x87   :  { %54 = dma.vmem_to_hbm [thread:$0]  %s50_s16, 256, %s52_s19, [#allocation4]  }
  0x88   :  { %117 = dma.done.wait [#allocation4], 256  }
  0x89   :  { %118 = vsyncadd [#allocation4], 4294967040 }
  0x8a   :  { %59 = vsyncpa [#allocation3], 1 }
  0x8b   :  { %60 = vsyncpa [#allocation4], 1 }

</bundles_post_ra>
